<compile_context>
chip_gen: v7x
topology: tpu7x:2x2x1
jax: 0.10.0
libtpu: 0.0.40
codegen_flags: <defaults>
</compile_context>

<pallas_src>
import numpy as np
import jax
import jax.numpy as jnp
from jax import lax
from jax.experimental import pallas as pl
from jax.experimental.pallas import tpu as pltpu


def _round_up(v, m):
    return (v + m - 1) // m * m


def _resolve_edge_chains(edge_index_np, num_nodes, num_edges):
    """Host-side resolution of the in-order edge scatter chain.

    Simulates the PyTorch loop symbolically.  After all edges, node n holds
        x_prev[roots[n]] - sum_{j : A[n, j] == 1} edge_attr_prev[j]
    Coefficients are provably 0/1 because edge j's row can only inherit
    already-processed (smaller-index) edges, never edge j itself.
    """
    roots = np.arange(num_nodes, dtype=np.int64)
    A = np.zeros((num_nodes, num_edges), dtype=np.float32)
    for i in range(num_edges):
        s = int(edge_index_np[0, i])
        e = int(edge_index_np[1, i])
        new_root = roots[s]              # read BEFORE write (handles s == e)
        new_row = A[s].copy()
        new_row[i] += 1.0
        roots[e] = new_root
        A[e] = new_row
    return roots, A


def _gnn_matmul_kernel(g_ref, a_ref, x_ref, ea_ref, out_ref):
    # OUT = G @ X - A @ EA  (both on the MXU, f32 accumulation).
    gx = jnp.dot(g_ref[...], x_ref[...], preferred_element_type=jnp.float32)
    ae = jnp.dot(a_ref[...], ea_ref[...], preferred_element_type=jnp.float32)
    out_ref[...] = (gx - ae).astype(out_ref.dtype)


def gnn_forward(x, edge_attr, edge_index, *, max_lane_block=2048):
    """x: (T, N, F) float, edge_attr: (T, E, F) float, edge_index: (2, E) int (static)."""
    T, N, F = x.shape
    E = edge_index.shape[1]
    assert edge_attr.shape[0] == T and edge_attr.shape[1] == E

    if T <= 1:
        return x

    # edge_index must be a concrete (trace-time constant) array, as for a
    # fixed road graph (PEMS04).
    # TODO(synk): if the graph is traced / changes per call, the chain
    # resolution must stay on-device (serial edge loop); not implemented here.
    ei_np = np.asarray(jax.device_get(edge_index)).astype(np.int64)
    roots, A = _resolve_edge_chains(ei_np, N, E)

    # Pad rows to sublane multiples; stacked-timestep lane axis to 128.
    N_pad = _round_up(N, 8)
    E_pad = _round_up(E, 8)
    L = (T - 1) * F
    lane_block = min(_round_up(L, 128), max_lane_block)
    Lpad = _round_up(L, lane_block)
    n_chunks = Lpad // lane_block

    # One-hot gather matrix and 0/1 chain matrix (host precomputed).
    G_np = np.zeros((N_pad, N_pad), dtype=np.float32)
    G_np[np.arange(N), roots] = 1.0
    A_np = np.zeros((N_pad, E_pad), dtype=np.float32)
    A_np[:N, :E] = A
    G = jnp.asarray(G_np, dtype=x.dtype)
    A_pad = jnp.asarray(A_np, dtype=x.dtype)

    # Stack independent timesteps onto the lane axis: lane slot = tau*F + f.
    xs = jnp.transpose(x[:-1], (1, 0, 2)).reshape(N, L)            # (N, (T-1)*F)
    eas = jnp.transpose(edge_attr[:-1], (1, 0, 2)).reshape(E, L)   # (E, (T-1)*F)
    xs = jnp.pad(xs, ((0, N_pad - N), (0, Lpad - L)))
    eas = jnp.pad(eas, ((0, E_pad - E), (0, Lpad - L)))

    out = pl.pallas_call(
        _gnn_matmul_kernel,
        out_shape=jax.ShapeDtypeStruct((N_pad, Lpad), x.dtype),
        grid=(n_chunks,),
        in_specs=[
            pl.BlockSpec((N_pad, N_pad), lambda c: (0, 0)),          # G (resident)
            pl.BlockSpec((N_pad, E_pad), lambda c: (0, 0)),          # A (resident)
            pl.BlockSpec((N_pad, lane_block), lambda c: (0, c)),     # X chunk
            pl.BlockSpec((E_pad, lane_block), lambda c: (0, c)),     # EA chunk
        ],
        out_specs=pl.BlockSpec((N_pad, lane_block), lambda c: (0, c)),
        compiler_params=pltpu.CompilerParams(
            dimension_semantics=("parallel",),   # chunks independent (v7x megacore)
        ),
    )(G, A_pad, xs, eas)

    # Un-stack: (N_pad, Lpad) -> (T-1, N, F), then write into x (no concat copy).
    upd = out[:N, :L].reshape(N, T - 1, F)
    upd = jnp.transpose(upd, (1, 0, 2)).astype(x.dtype)             # (T-1, N, F)
    return lax.dynamic_update_slice(x, upd, (1, 0, 0))              # (T, N, F)


def _reference_forward(x, edge_attr, edge_index):
    """Pure numpy re-implementation of the PyTorch loop for verification."""
    x = np.asarray(x).copy()
    edge_attr = np.asarray(edge_attr)
    edge_index = np.asarray(edge_index)
    updated = x.copy()
    for t in range(1, x.shape[0]):
        temp = x[t - 1].copy()
        for i in range(edge_index.shape[1]):
            s = edge_index[0, i]
            e = edge_index[1, i]
            temp[e] = temp[s] - edge_attr[t - 1, i]
        updated[t] = temp
    return updated


if __name__ == "__main__":
    # Small deterministic shapes; node_features == edge_features (= F) so the
    # subtraction is elementwise exactly as in the PyTorch module.
    T, N, F, E = 8, 16, 4, 24

    key = jax.random.PRNGKey(0)
    kx, ka, ks, ke = jax.random.split(key, 4)

    x = jax.random.normal(kx, (T, N, F), dtype=jnp.float32)
    edge_attr = jax.random.normal(ka, (T, E, F), dtype=jnp.float32)
    edge_index = jnp.stack([
        jax.random.randint(ks, (E,), 0, N, dtype=jnp.int32),
        jax.random.randint(ke, (E,), 0, N, dtype=jnp.int32),
    ], axis=0)                                            # (2, E)

    out = jax.block_until_ready(gnn_forward(x, edge_attr, edge_index))

    ref = _reference_forward(x, edge_attr, edge_index)
    np.testing.assert_allclose(np.asarray(out), ref, rtol=1e-5, atol=1e-5)

    print("KERNEL_OK")
</pallas_src>

<mosaic_0001>
module attributes {stable_mosaic.version = 11 : i64} {
  func.func @_gnn_matmul_kernel(%arg0: i32, %arg1: memref<16x16xf32, #tpu.memory_space<vmem>>, %arg2: memref<16x24xf32, #tpu.memory_space<vmem>>, %arg3: memref<16x128xf32, #tpu.memory_space<vmem>>, %arg4: memref<24x128xf32, #tpu.memory_space<vmem>>, %arg5: memref<16x128xf32, #tpu.memory_space<vmem>>) attributes {dimension_semantics = [#tpu.dimension_semantics<parallel>], iteration_bounds = array<i64: 1>, scalar_prefetch = 0 : i64, scratch_operands = 0 : i64, tpu.core_type = #tpu.core_type<tc>, window_params = [{pipeline_mode = #tpu.pipeline_mode<synchronous>, transform_indices = @transform_0, window_bounds = array<i64: 16, 16>}, {pipeline_mode = #tpu.pipeline_mode<synchronous>, transform_indices = @transform_1, window_bounds = array<i64: 16, 24>}, {transform_indices = @transform_2, window_bounds = array<i64: 16, 128>}, {transform_indices = @transform_3, window_bounds = array<i64: 24, 128>}, {transform_indices = @transform_4, window_bounds = array<i64: 16, 128>}]} {
    %c0 = arith.constant 0 : index
    %c0_0 = arith.constant 0 : index
    %0 = vector.load %arg1[%c0, %c0_0] : memref<16x16xf32, #tpu.memory_space<vmem>>, vector<16x16xf32>
    %c0_1 = arith.constant 0 : index
    %c0_2 = arith.constant 0 : index
    %1 = vector.load %arg3[%c0_1, %c0_2] : memref<16x128xf32, #tpu.memory_space<vmem>>, vector<16x128xf32>
    %cst = arith.constant dense<0.000000e+00> : vector<16x128xf32>
    %2 = tpu.matmul %0, %1, %cst {dimension_numbers = #tpu.dot_dimension_numbers<[1], [0], [0], [1], [0, 0, 1, 1], [], []>} : vector<16x16xf32>, vector<16x128xf32>, vector<16x128xf32> -> vector<16x128xf32>
    %c0_3 = arith.constant 0 : index
    %c0_4 = arith.constant 0 : index
    %3 = vector.load %arg2[%c0_3, %c0_4] : memref<16x24xf32, #tpu.memory_space<vmem>>, vector<16x24xf32>
    %c0_5 = arith.constant 0 : index
    %c0_6 = arith.constant 0 : index
    %4 = vector.load %arg4[%c0_5, %c0_6] : memref<24x128xf32, #tpu.memory_space<vmem>>, vector<24x128xf32>
    %cst_7 = arith.constant dense<0.000000e+00> : vector<16x128xf32>
    %5 = tpu.matmul %3, %4, %cst_7 {dimension_numbers = #tpu.dot_dimension_numbers<[1], [0], [0], [1], [0, 0, 1, 1], [], []>} : vector<16x24xf32>, vector<24x128xf32>, vector<16x128xf32> -> vector<16x128xf32>
    %6 = arith.subf %2, %5 : vector<16x128xf32>
    %c0_8 = arith.constant 0 : index
    %c0_9 = arith.constant 0 : index
    %7 = vector.load %arg5[%c0_8, %c0_9] : memref<16x128xf32, #tpu.memory_space<vmem>>, vector<16x128xf32>
    tpu.vector_store %arg5[%c0_8, %c0_9], %6 {strides = array<i32>} : memref<16x128xf32, #tpu.memory_space<vmem>>, vector<16x128xf32>,
    return
  }
  func.func @transform_0(%arg0: i32) -> (i32, i32) {
    %c0_i32 = arith.constant 0 : i32
    %c0_i32_0 = arith.constant 0 : i32
    %c0_i32_1 = arith.constant 0 : i32
    return %c0_i32, %c0_i32_0 : i32, i32
  }
  func.func @transform_1(%arg0: i32) -> (i32, i32) {
    %c0_i32 = arith.constant 0 : i32
    %c0_i32_0 = arith.constant 0 : i32
    %c0_i32_1 = arith.constant 0 : i32
    return %c0_i32, %c0_i32_0 : i32, i32
  }
  func.func @transform_2(%arg0: i32) -> (i32, i32) {
    %c0_i32 = arith.constant 0 : i32
    %c0_i32_0 = arith.constant 0 : i32
    return %c0_i32, %arg0 : i32, i32
  }
  func.func @transform_3(%arg0: i32) -> (i32, i32) {
    %c0_i32 = arith.constant 0 : i32
    %c0_i32_0 = arith.constant 0 : i32
    return %c0_i32, %arg0 : i32, i32
  }
  func.func @transform_4(%arg0: i32) -> (i32, i32) {
    %c0_i32 = arith.constant 0 : i32
    %c0_i32_0 = arith.constant 0 : i32
    return %c0_i32, %arg0 : i32, i32
  }
}

</mosaic_0001>

<bundles_post_ra>
// kernel: tpu_custom_call.1
= control target key start
LH: loop header
LB: loop body
LE: loop exit
PB: predicated region body
PF: predicated region fallthrough
CT: control target
= control target key end

     0   :  { %9 = vsyncpa [#allocation3], 0  ;;  %s556_s0 = inlined_call_operand.hbm [shape: f32[16,16], index: 0, kind: input, shape index: {}]   ;;  %s557_s1 = inlined_call_operand.hbm [shape: f32[16,24], index: 1, kind: input, shape index: {}]   ;;  %s558_s2 = inlined_call_operand.hbm [shape: f32[16,128], index: 2, kind: input, shape index: {}]   ;;  %s559_s3 = inlined_call_operand.hbm [shape: f32[24,128], index: 3, kind: input, shape index: {}]   ;;  %s560_s4 = inlined_call_operand.hbm [shape: f32[16,128], index: 4, kind: output, shape index: {}]  }
   0x1   :  { %10 = vsyncpa [#allocation6], 0 }
   0x2   :  { %11 = vsyncpa [#allocation9], 0 }
   0x3   :  { %12 = vsyncpa [#allocation4], 0  ;;  %s431_s15 = smov [#allocation5]   ;;  %s432_s17 = smov [#allocation2]  }
   0x4   :  { %s30_s16 = sshll.u32 %s431_s15, 4  ;;  %s18_s18 = sshll.u32 %s432_s17, 4  ;;  %s31_s16 = int_to_ptr.vmem [resolvable:$true] %s30_s16  ;;  %s463_s18 = int_to_ptr.vmem [resolvable:$true] %s18_s18 }
   0x5   :  { %s313_s21 = scalar_lea.hbm %s557_s1, 256 }
   0x6   :  { %p314_p0 = scmp.ne.s32.totalorder %s557_s1, %s313_s21  ;;  %p317_p1 = scmp.lt.u32.totalorder %s313_s21, %s557_s1 }
   0x8   :  { %p319_p2 = pnand %p317_p1, %p314_p0 }
   0xa   :  { %322 = shalt.err (!%p319_p2)
}
   0xb   :  { %s323_s26 = scalar_lea.vmem %s31_s16, 256  ;;  %p328_p4 = scmp.lt.s32.totalorder %s31_s16, %s31_s16 }
   0xc   :  { %p324_p3 = scmp.ne.s32.totalorder %s31_s16, %s323_s26  ;;  %p329_p5 = scmp.lt.s32.totalorder %s323_s26, %s323_s26 }
   0xe   :  { %p330_p6 = por %p329_p5, %p328_p4 }
  0x10   :  { %p331_p7 = pnand %p330_p6, %p324_p3 }
  0x12   :  { %334 = shalt.err (!%p331_p7)
}
  0x13   :  { %s433_s27 = smov 128   ;;  %s434_s28 = smov 8  }
  0x14   :  { %36 = dma.hbm_to_vmem [thread:$0]  %s557_s1, 256, %s31_s16, [#allocation6], %s433_s27, %s433_s27, %s434_s28  }
  0x15   :  { %s335_s7 = scalar_lea.hbm %s556_s0, 256 }
  0x16   :  { %p336_p8 = scmp.ne.s32.totalorder %s556_s0, %s335_s7  ;;  %p339_p9 = scmp.lt.u32.totalorder %s335_s7, %s556_s0 }
  0x18   :  { %p341_p10 = pnand %p339_p9, %p336_p8 }
  0x1a   :  { %344 = shalt.err (!%p341_p10)
}
  0x1b   :  { %s345_s12 = scalar_lea.vmem %s463_s18, 256  ;;  %p350_p12 = scmp.lt.s32.totalorder %s463_s18, %s463_s18 }
  0x1c   :  { %p346_p11 = scmp.ne.s32.totalorder %s463_s18, %s345_s12  ;;  %p351_p13 = scmp.lt.s32.totalorder %s345_s12, %s345_s12 }
  0x1e   :  { %p352_p0 = por %p351_p13, %p350_p12 }
  0x20   :  { %p353_p1 = pnand %p352_p0, %p346_p11 }
  0x22   :  { %356 = shalt.err (!%p353_p1)
}
  0x23   :  { %24 = dma.hbm_to_vmem [thread:$0]  %s556_s0, 256, %s463_s18, [#allocation3], %s433_s27, %s433_s27, %s434_s28  }
  0x24   :  { %s435_s14 = smov [#allocation7]   ;;  %s436_s16 = smov [#allocation8]  }
  0x25   :  { %s42_s15 = sshll.u32 %s435_s14, 4  ;;  %s54_s17 = sshll.u32 %s436_s16, 4  ;;  %s43_s15 = int_to_ptr.vmem [resolvable:$true] %s42_s15  ;;  %s500_s17 = int_to_ptr.vmem [resolvable:$true] %s54_s17 }
  0x26   :  { %s357_s21 = scalar_lea.hbm %s558_s2, 256 }
  0x27   :  { %p358_p2 = scmp.ne.s32.totalorder %s558_s2, %s357_s21  ;;  %p361_p3 = scmp.lt.u32.totalorder %s357_s21, %s558_s2 }
  0x29   :  { %p363_p4 = pnand %p361_p3, %p358_p2 }
  0x2b   :  { %366 = shalt.err (!%p363_p4)
}
  0x2c   :  { %s367_s0 = scalar_lea.vmem %s43_s15, 256  ;;  %p372_p6 = scmp.lt.s32.totalorder %s43_s15, %s43_s15 }
  0x2d   :  { %p368_p5 = scmp.ne.s32.totalorder %s43_s15, %s367_s0  ;;  %p373_p7 = scmp.lt.s32.totalorder %s367_s0, %s367_s0 }
  0x2f   :  { %p374_p8 = por %p373_p7, %p372_p6 }
  0x31   :  { %p375_p9 = pnand %p374_p8, %p368_p5 }
  0x33   :  { %378 = shalt.err (!%p375_p9)
}
  0x34   :  { %48 = dma.hbm_to_vmem [thread:$0]  %s558_s2, 256, %s43_s15, [#allocation6], %s433_s27, %s433_s27, %s434_s28  }
  0x35   :  { %s379_s5 = scalar_lea.hbm %s559_s3, 384 }
  0x36   :  { %p380_p10 = scmp.ne.s32.totalorder %s559_s3, %s379_s5  ;;  %p383_p11 = scmp.lt.u32.totalorder %s379_s5, %s559_s3 }
  0x38   :  { %p385_p12 = pnand %p383_p11, %p380_p10 }
  0x3a   :  { %388 = shalt.err (!%p385_p12)
}
  0x3b   :  { %s389_s10 = scalar_lea.vmem %s500_s17, 384  ;;  %p394_p0 = scmp.lt.s32.totalorder %s500_s17, %s500_s17 }
  0x3c   :  { %p390_p13 = scmp.ne.s32.totalorder %s500_s17, %s389_s10  ;;  %p395_p1 = scmp.lt.s32.totalorder %s389_s10, %s389_s10 }
  0x3e   :  { %p396_p2 = por %p395_p1, %p394_p0 }
  0x40   :  { %p397_p3 = pnand %p396_p2, %p390_p13 }
  0x42   :  { %400 = shalt.err (!%p397_p3)
}
  0x43   :  { %60 = dma.hbm_to_vmem [thread:$0]  %s559_s3, 384, %s500_s17, [#allocation9], %s433_s27, %s433_s27, %s434_s28  }
  0x44   :  { %423 = dma.done.wait [#allocation3], 256  }
  0x45   :  { %424 = vsyncadd [#allocation3], 4294967040 }
  0x46   :  { %425 = dma.done.wait [#allocation6], 512  }
  0x47   :  { %426 = vsyncadd [#allocation6], 4294966784 }
  0x48   :  { %427 = dma.done.wait [#allocation9], 384  }
  0x49   :  { %428 = vsyncadd [#allocation9], 4294966912  ;;  %vm77_vm0 = vcmask 130048   ;;  %v161_v0 = vld [vmem:[#allocation8] sm:$0xff]  ;;  %v162_v1 = vld [vmem:[#allocation8 + $0x8] sm:$0xff]  ;;  %vm164_vm1 = vcmask 195584  }
  0x4a   :  { %v75_v2 = vld [vmem:[#allocation7] sm:$0xff]  ;;  %v302_v3 = vpack.c.bf16 %v162_v1, %v161_v0  ;;  %v76_v4 = vld [vmem:[#allocation7 + $0x8] sm:$0xff]  ;;  %v159_v8 = vld [vmem:[#allocation5] sm:$0xff]  ;;  %s437_s3 = smov [#allocation10]  }
  0x4b   :  { %v73_v5 = vld [vmem:[#allocation2] sm:$0xff]  ;;  %v298_v6 = vpack.c.bf16 %v76_v4, %v75_v2  ;;  %295 = vmatprep.mubr.msk.f32.mxu1 %vm164_vm1, %v159_v8  ;;  %v74_v9 = vld [vmem:[#allocation2 + $0x8] sm:$0xff]  ;;  %v160_v10 = vld [vmem:[#allocation5 + $0x8] sm:$0xff]  ;;  %s255_s12 = sshll.u32 %s437_s3, 4  ;;  %s256_s12 = int_to_ptr.vmem [resolvable:$true] %s255_s12 }
  0x4c   :  { %286 = vmatprep.mubr.msk.f32.mxu0 %vm77_vm0, %v73_v5  ;;  %v163_v7 = vld [vmem:[#allocation8 + $0x10] sm:$0xff]  ;;  %303 = vmatprep.subr.bf16.mxu1 %v302_v3  ;;  %s401_s1 = scalar_lea.vmem %s256_s12, 256  ;;  %p406_p5 = scmp.lt.s32.totalorder %s256_s12, %s256_s12 }
  0x4d   :  { %299 = vmatprep.subr.bf16.mxu0 %v298_v6  ;;  %305 = vmatpush3.bf16.msra.mxu1 %v302_v3  ;;  %p402_p4 = scmp.ne.s32.totalorder %s256_s12, %s401_s1  ;;  %p407_p6 = scmp.lt.s32.totalorder %s401_s1, %s401_s1 }
  0x4e   :  { %301 = vmatpush3.bf16.msra.mxu0 %v298_v6  ;;  %293 = vmatprep.subr.mxu1 %v163_v7 }
  0x4f   :  { %p408_p7 = por %p407_p6, %p406_p5 }
  0x51   :  { %287 = vmatmul.mubr.msk.f32.vlgmr.msra.gmra.mrb[0].mxu0 %vm77_vm0, %v74_v9  ;;  %294 = vmatpush3.msra.mxu1 %v163_v7  ;;  %p409_p8 = pnand %p408_p7, %p402_p4 }
  0x52   :  { %296 = vmatmul.mubr.msk.f32.vlgmr.msra.gmra.mrb[0].mxu1 %vm164_vm1, %v160_v10 }
 0x124   :  { %v288_v11 = vpop.f32.mrb[0].mxu0 }
 0x125   :  { %v150_v12 = vpop.f32.mrb[1].mxu0  ;;  %v297_v13 = vpop.f32.mrb[0].mxu1 }
 0x126   :  { %v247_v14 = vsub.f32 %v288_v11, %v297_v13  ;;  %v237_v15 = vpop.f32.mrb[1].mxu1 }
 0x127   :  { %v246_v16 = vsub.f32 %v150_v12, %v237_v15 }
 0x128   :  { %249 = vst [vmem:[#allocation10 + $0x8] sm:$0xff] %v247_v14 }
 0x129   :  { %248 = vst [vmem:[#allocation10] sm:$0xff] %v246_v16 }
 0x12a   :  { %412 = shalt.err (!%p409_p8)
}
 0x12b   :  { %s413_s15 = scalar_lea.hbm %s560_s4, 256 }
 0x12c   :  { %p414_p9 = scmp.ne.s32.totalorder %s560_s4, %s413_s15  ;;  %p417_p10 = scmp.lt.u32.totalorder %s413_s15, %s560_s4 }
 0x12e   :  { %p419_p11 = pnand %p417_p10, %p414_p9 }
 0x130   :  { %422 = shalt.err (!%p419_p11)
}
 0x131   :  { %261 = dma.vmem_to_hbm [thread:$0]  %s256_s12, 256, %s560_s4, [#allocation4], %s433_s27, %s433_s27, %s434_s28  }
 0x132   :  { %429 = dma.done.wait [#allocation4], 256  }
 0x133   :  { %430 = vsyncadd [#allocation4], 4294967040 }
 0x134   :  { %265 = vsyncpa [#allocation3], 1 }
 0x135   :  { %266 = vsyncpa [#allocation6], 1 }
 0x136   :  { %267 = vsyncpa [#allocation9], 1 }
 0x137   :  { %268 = vsyncpa [#allocation4], 1 }

</bundles_post_ra>
